<compile_context>
chip_gen: v7x
topology: tpu7x:2x2x1
jax: 0.10.0
libtpu: 0.0.40
codegen_flags: <defaults>
</compile_context>

<pallas_src>
import functools

import jax
import jax.numpy as jnp
from jax.experimental import pallas as pl
from jax.experimental.pallas import tpu as pltpu


# ---------------------------------------------------------------------------
# Packed-parameter layout (sublane-aligned so in-kernel slices are cheap).
# ---------------------------------------------------------------------------
def _align8(n):
    return ((n + 7) // 8) * 8


def _param_offsets(state_size, hidden_size):
    o_w1 = 0
    o_b1 = _align8(state_size)
    o_w2 = o_b1 + 8
    o_b2 = o_w2 + _align8(hidden_size)
    o_w3 = o_b2 + 8
    o_b3 = o_w3 + 8
    rows = o_b3 + 8
    return {"w1": o_w1, "b1": o_b1, "w2": o_w2, "b2": o_b2,
            "w3": o_w3, "b3": o_b3, "rows": rows}


def pack_params(params):
    """Pack all Critic parameters into one kernel-ready (rows, H) f32 array.

    Call once (parameter preprocessing), not per forward pass.
    """
    w1 = jnp.asarray(params["w1"], jnp.float32)               # (S, H)
    b1 = jnp.asarray(params["b1"], jnp.float32).reshape(1, -1)
    w2 = jnp.asarray(params["w2"], jnp.float32)               # (H, H)
    b2 = jnp.asarray(params["b2"], jnp.float32).reshape(1, -1)
    w3 = jnp.asarray(params["w3"], jnp.float32).reshape(1, -1)  # fc3 weight row
    b3 = jnp.asarray(params["b3"], jnp.float32).reshape(1, 1)   # fc3 bias scalar

    state_size, hidden_size = w1.shape
    off = _param_offsets(state_size, hidden_size)

    packed = jnp.zeros((off["rows"], hidden_size), jnp.float32)
    packed = packed.at[off["w1"]:off["w1"] + state_size].set(w1)
    packed = packed.at[off["b1"]:off["b1"] + 1].set(b1)
    packed = packed.at[off["w2"]:off["w2"] + hidden_size].set(w2)
    packed = packed.at[off["b2"]:off["b2"] + 1].set(b2)
    packed = packed.at[off["w3"]:off["w3"] + 1].set(w3)
    packed = packed.at[off["b3"]:off["b3"] + 1, 0:1].set(b3)
    return packed


# ---------------------------------------------------------------------------
# Kernel
# ---------------------------------------------------------------------------
def _critic_kernel(x_ref, p_ref, out_ref, *, state_size, hidden_size, off):
    """One batch tile of the fused 3-layer MLP.

    x_ref  : (TB, S)       state tile
    p_ref  : (rows, H)     packed parameters (VMEM-resident, constant block)
    out_ref: (1, TB)       lane-dense value row
    """
    x = x_ref[...].astype(jnp.float32)

    w1 = p_ref[off["w1"]:off["w1"] + state_size, :]            # (S, H)
    b1 = p_ref[off["b1"]:off["b1"] + 1, :]                     # (1, H)
    w2 = p_ref[off["w2"]:off["w2"] + hidden_size, :]           # (H, H)
    b2 = p_ref[off["b2"]:off["b2"] + 1, :]                     # (1, H)
    w3 = p_ref[off["w3"]:off["w3"] + 1, :]                     # (1, H)
    b3 = p_ref[off["b3"]:off["b3"] + 1, 0:1]                   # (1, 1)

    # fc1 + ReLU (MXU)
    h1 = jnp.dot(x, w1, preferred_element_type=jnp.float32) + b1
    h1 = jnp.maximum(h1, 0.0)

    # fc2 + ReLU (MXU)
    h2 = jnp.dot(h1, w2, preferred_element_type=jnp.float32) + b2
    h2 = jnp.maximum(h2, 0.0)

    # fc3: N=1 matmul as VPU multiply + lane reduction (MXU stays free), then
    # an XLU transpose of the small value column -> lane-dense (1, TB) store.
    v_col = jnp.sum(h2 * w3, axis=-1, keepdims=True) + b3      # (TB, 1)
    out_ref[...] = jnp.transpose(v_col).astype(out_ref.dtype)  # (1, TB)


# ---------------------------------------------------------------------------
# Tiling policy
# ---------------------------------------------------------------------------
_MAX_BLOCK_B = 32768  # multiple of 128; keeps intermediates well under VMEM


def _num_tensorcores():
    try:
        kind = jax.devices()[0].device_kind
        return 2 if "7" in kind else 1  # v7x has 2 TCs; v5e/v6e have 1
    except Exception:
        return 1


def _choose_block_b(batch):
    if batch > _MAX_BLOCK_B:
        return _MAX_BLOCK_B
    # v7x: split large batches into two lane-aligned tiles so the "parallel"
    # grid axis shards across both TensorCores.  v5e/v6e: single grid step
    # (extra steps are pure serial overhead, ~0.35 us each).
    if batch >= 256 and _num_tensorcores() >= 2:
        half = -(-batch // 2)
        return min(((half + 127) // 128) * 128, _MAX_BLOCK_B)
    return batch


# ---------------------------------------------------------------------------
# Forward wrapper (mirrors Critic.forward: returns (value, None))
# ---------------------------------------------------------------------------
def critic_forward(state, packed_params, *, block_b=None):
    B, state_size = state.shape
    rows, hidden_size = packed_params.shape
    off = _param_offsets(state_size, hidden_size)
    assert rows == off["rows"], "packed_params does not match state_size"

    if block_b is None:
        block_b = _choose_block_b(B)
    if block_b >= B:
        block_b = B                                   # single full-array tile
    else:
        # Multi-tile: lane-dense output block must be 128-aligned.
        block_b = ((block_b + 127) // 128) * 128
        if block_b >= B:
            block_b = B

    grid = (pl.cdiv(B, block_b),)

    kernel = functools.partial(
        _critic_kernel, state_size=state_size, hidden_size=hidden_size, off=off)

    value_row = pl.pallas_call(
        kernel,
        out_shape=jax.ShapeDtypeStruct((1, B), jnp.float32),   # lane-dense
        grid=grid,
        in_specs=[
            pl.BlockSpec((block_b, state_size), lambda i: (i, 0)),  # state tile
            pl.BlockSpec((rows, hidden_size), lambda i: (0, 0)),    # packed params
        ],
        out_specs=pl.BlockSpec((1, block_b), lambda i: (0, i)),
        compiler_params=pltpu.CompilerParams(
            dimension_semantics=("parallel",),          # batch tiles independent
            vmem_limit_bytes=32 * 1024 * 1024,           # safe on v7x (64 MiB)
        ),
    )(state, packed_params)

    return value_row.reshape(B, 1), None


# ---------------------------------------------------------------------------
# Parameter init + pure-JAX reference
# ---------------------------------------------------------------------------
def init_params(key, state_size, hidden_size=32):
    """Deterministic parameter init (uniform, PyTorch-Linear-like bounds)."""
    ks = jax.random.split(key, 6)

    def uinit(k, shape, fan_in):
        bound = 1.0 / jnp.sqrt(jnp.float32(fan_in))
        return jax.random.uniform(k, shape, jnp.float32, -bound, bound)

    # Stored as [in, out] so the kernel computes x @ W + b.
    return {
        "w1": uinit(ks[0], (state_size, hidden_size), state_size),
        "b1": uinit(ks[1], (1, hidden_size), state_size),
        "w2": uinit(ks[2], (hidden_size, hidden_size), hidden_size),
        "b2": uinit(ks[3], (1, hidden_size), hidden_size),
        "w3": uinit(ks[4], (hidden_size, 1), hidden_size),
        "b3": uinit(ks[5], (1, 1), hidden_size),
    }


def critic_reference(state, params):
    h1 = jnp.maximum(state @ params["w1"] + params["b1"], 0.0)
    h2 = jnp.maximum(h1 @ params["w2"] + params["b2"], 0.0)
    return h2 @ params["w3"] + params["b3"]


if __name__ == "__main__":
    key = jax.random.PRNGKey(0)
    k_params, k_state, k_big = jax.random.split(key, 3)

    batch = 8
    state_size = 4      # observation_space.shape[0]
    hidden_size = 32

    params = init_params(k_params, state_size, hidden_size)
    packed = pack_params(params)          # kernel-ready layout, computed once

    # 1) Small batch, single full-array tile.
    state = jax.random.normal(k_state, (batch, state_size), jnp.float32)
    value, extra = critic_forward(state, packed)
    value = jax.block_until_ready(value)
    assert extra is None
    assert value.shape == (batch, 1)
    ref = critic_reference(state, params)
    assert jnp.allclose(value, ref, atol=1e-5, rtol=1e-5), "f32 mismatch vs reference"

    # 2) Multi-tile grid with a ragged boundary block (exercises pipelining,
    #    lane-dense out-block alignment and OOB masking).
    big_batch = 200
    big_state = jax.random.normal(k_big, (big_batch, state_size), jnp.float32)
    big_value, _ = critic_forward(big_state, packed, block_b=128)
    big_value = jax.block_until_ready(big_value)
    big_ref = critic_reference(big_state, params)
    assert big_value.shape == (big_batch, 1)
    assert jnp.allclose(big_value, big_ref, atol=1e-5, rtol=1e-5), "tiled mismatch"

    # 3) Default tiling policy (single step on v5e/v6e, 2-way split on v7x).
    mid_state = jax.random.normal(jax.random.PRNGKey(1), (512, state_size), jnp.float32)
    mid_value, _ = critic_forward(mid_state, packed)
    mid_value = jax.block_until_ready(mid_value)
    mid_ref = critic_reference(mid_state, params)
    assert jnp.allclose(mid_value, mid_ref, atol=1e-5, rtol=1e-5), "default-tile mismatch"

    print("KERNEL_OK")
</pallas_src>

<mosaic_0001>
module attributes {stable_mosaic.version = 11 : i64} {
  func.func @_critic_kernel(%arg0: i32, %arg1: memref<8x4xf32, #tpu.memory_space<vmem>>, %arg2: memref<72x32xf32, #tpu.memory_space<vmem>>, %arg3: memref<1x8xf32, #tpu.memory_space<vmem>>) attributes {dimension_semantics = [#tpu.dimension_semantics<parallel>], iteration_bounds = array<i64: 1>, scalar_prefetch = 0 : i64, scratch_operands = 0 : i64, tpu.core_type = #tpu.core_type<tc>, window_params = [{transform_indices = @transform_0, window_bounds = array<i64: 8, 4>}, {pipeline_mode = #tpu.pipeline_mode<synchronous>, transform_indices = @transform_1, window_bounds = array<i64: 72, 32>}, {transform_indices = @transform_2, window_bounds = array<i64: 1, 8>}]} {
    %c0 = arith.constant 0 : index
    %c0_0 = arith.constant 0 : index
    %0 = vector.load %arg1[%c0, %c0_0] : memref<8x4xf32, #tpu.memory_space<vmem>>, vector<8x4xf32>
    %c0_1 = arith.constant 0 : index
    %c0_2 = arith.constant 0 : index
    %1 = vector.load %arg2[%c0_1, %c0_2] : memref<72x32xf32, #tpu.memory_space<vmem>>, vector<4x32xf32>
    %c8 = arith.constant 8 : index
    %c0_3 = arith.constant 0 : index
    %2 = vector.load %arg2[%c8, %c0_3] : memref<72x32xf32, #tpu.memory_space<vmem>>, vector<1x32xf32>
    %c16 = arith.constant 16 : index
    %c0_4 = arith.constant 0 : index
    %3 = vector.load %arg2[%c16, %c0_4] : memref<72x32xf32, #tpu.memory_space<vmem>>, vector<32x32xf32>
    %c48 = arith.constant 48 : index
    %c0_5 = arith.constant 0 : index
    %4 = vector.load %arg2[%c48, %c0_5] : memref<72x32xf32, #tpu.memory_space<vmem>>, vector<1x32xf32>
    %c56 = arith.constant 56 : index
    %c0_6 = arith.constant 0 : index
    %5 = vector.load %arg2[%c56, %c0_6] : memref<72x32xf32, #tpu.memory_space<vmem>>, vector<1x32xf32>
    %c64 = arith.constant 64 : index
    %c0_7 = arith.constant 0 : index
    %6 = vector.load %arg2[%c64, %c0_7] : memref<72x32xf32, #tpu.memory_space<vmem>>, vector<1x1xf32>
    %cst = arith.constant dense<0.000000e+00> : vector<8x32xf32>
    %7 = tpu.matmul %0, %1, %cst {dimension_numbers = #tpu.dot_dimension_numbers<[1], [0], [0], [1], [0, 0, 1, 1], [], []>} : vector<8x4xf32>, vector<4x32xf32>, vector<8x32xf32> -> vector<8x32xf32>
    %8 = vector.broadcast %2 : vector<1x32xf32> to vector<8x32xf32>
    %9 = arith.addf %7, %8 : vector<8x32xf32>
    %cst_8 = arith.constant 0.000000e+00 : f32
    %10 = vector.broadcast %cst_8 : f32 to vector<8x32xf32>
    %11 = arith.maximumf %9, %10 : vector<8x32xf32>
    %cst_9 = arith.constant dense<0.000000e+00> : vector<8x32xf32>
    %12 = tpu.matmul %11, %3, %cst_9 {dimension_numbers = #tpu.dot_dimension_numbers<[1], [0], [0], [1], [0, 0, 1, 1], [], []>} : vector<8x32xf32>, vector<32x32xf32>, vector<8x32xf32> -> vector<8x32xf32>
    %13 = vector.broadcast %4 : vector<1x32xf32> to vector<8x32xf32>
    %14 = arith.addf %12, %13 : vector<8x32xf32>
    %cst_10 = arith.constant 0.000000e+00 : f32
    %15 = vector.broadcast %cst_10 : f32 to vector<8x32xf32>
    %16 = arith.maximumf %14, %15 : vector<8x32xf32>
    %17 = vector.broadcast %5 : vector<1x32xf32> to vector<8x32xf32>
    %18 = arith.mulf %16, %17 : vector<8x32xf32>
    %cst_11 = arith.constant dense<0.000000e+00> : vector<8xf32>
    %19 = vector.multi_reduction <add>, %18, %cst_11 [1] : vector<8x32xf32> to vector<8xf32>
    %20 = vector.shape_cast %19 : vector<8xf32> to vector<8x1xf32>
    %21 = vector.broadcast %6 : vector<1x1xf32> to vector<8x1xf32>
    %22 = arith.addf %20, %21 : vector<8x1xf32>
    %23 = tpu.transpose %22, [1, 0] : vector<8x1xf32> -> vector<1x8xf32>
    %c0_12 = arith.constant 0 : index
    %c0_13 = arith.constant 0 : index
    %24 = vector.load %arg3[%c0_12, %c0_13] : memref<1x8xf32, #tpu.memory_space<vmem>>, vector<1x8xf32>
    tpu.vector_store %arg3[%c0_12, %c0_13], %23 {strides = array<i32>} : memref<1x8xf32, #tpu.memory_space<vmem>>, vector<1x8xf32>,
    return
  }
  func.func @transform_0(%arg0: i32) -> (i32, i32) {
    %c0_i32 = arith.constant 0 : i32
    %c0_i32_0 = arith.constant 0 : i32
    return %arg0, %c0_i32 : i32, i32
  }
  func.func @transform_1(%arg0: i32) -> (i32, i32) {
    %c0_i32 = arith.constant 0 : i32
    %c0_i32_0 = arith.constant 0 : i32
    %c0_i32_1 = arith.constant 0 : i32
    return %c0_i32, %c0_i32_0 : i32, i32
  }
  func.func @transform_2(%arg0: i32) -> (i32, i32) {
    %c0_i32 = arith.constant 0 : i32
    %c0_i32_0 = arith.constant 0 : i32
    return %c0_i32, %arg0 : i32, i32
  }
}

</mosaic_0001>

<bundles_post_ra>
// kernel: tpu_custom_call.1
= control target key start
LH: loop header
LB: loop body
LE: loop exit
PB: predicated region body
PF: predicated region fallthrough
CT: control target
= control target key end

     0   :  { %vm30_vm0 = vcmask 1043456   ;;  %v309_v2 = vmov 0.0   ;;  %vm310_vm1 = vmmov 0   ;;  %vm26_vm2 = vcmask 31744   ;;  %s370_s0 = inlined_call_operand.vmem [shape: f32[8,4], index: 0, kind: input, shape index: {}]   ;;  %s371_s1 = inlined_call_operand.vmem [shape: f32[72,32], index: 1, kind: input, shape index: {}]   ;;  %s372_s2 = inlined_call_operand.hbm [shape: f32[1,8], index: 2, kind: output, shape index: {}]  }
   0x1   :  { %v13_v0 = vld [vmem:[%s371_s1] sm:$0xf]  ;;  %259 = vmatprep.subr.mxu0 %v309_v2  ;;  %261 = vmatprep.mubr.msk.f32.mxu0 %vm310_vm1, %v309_v2  ;;  %v15_v3 = vld [vmem:[%s371_s1 + $0x10] sm:$0xff]  ;;  %v16_v4 = vld [vmem:[%s371_s1 + $0x18] sm:$0xff]  ;;  %v311_v5 = vmov 0.0|0.0  }
   0x2   :  { %v12_v1 = vld [vmem:[%s370_s0] sm:$0xff]  ;;  %260 = vmatpush3.msk.msra.mxu0 %vm30_vm0, %v13_v0  ;;  %275 = vmatprep.subr.bf16.mxu1 %v311_v5  ;;  %v276_v6 = vpack.c.bf16 %v16_v4, %v15_v3 }
   0x3   :  { %7 = vsyncpa [#allocation3], 0  ;;  %262 = vmatmul.mubr.msk.f32.vlgmr.msra.gmra.mrb[0].mxu0 %vm26_vm2, %v12_v1  ;;  %272 = vmatprep.mubr.msk.f32.mxu1 %vm310_vm1, %v309_v2  ;;  %v17_v7 = vld [vmem:[%s371_s1 + $0x20] sm:$0xff]  ;;  %v18_v8 = vld [vmem:[%s371_s1 + $0x28] sm:$0xff]  ;;  %vm109_vm3 = vcmask 261120   ;;  %s312_s28 = smov [#allocation2]  }
   0x4   :  { %277 = vmatpush3.bf16.msra.mxu1 %v276_v6  ;;  %v279_v9 = vpack.c.bf16 %v18_v8, %v17_v7  ;;  %v245_v10 = vld [vmem:[%s371_s1 + $0x8] ss:$0 sm:$0xff]  ;;  %v248_v15 = vld [vmem:[%s371_s1 + $0x30] ss:$0 sm:$0xff]  ;;  %v250_v19 = vld [vmem:[%s371_s1 + $0x38] ss:$0 sm:$0xff] }
   0x5   :  { %278 = vmatprep.subr.bf16.mxu1 %v311_v5  ;;  %v251_v23 = vld [vmem:[%s371_s1 + $0x40] ss:$0 sm:$0xff]  ;;  %s237_s29 = sshll.u32 %s312_s28, 4  ;;  %vm229_vm4 = vcmask 57344   ;;  %s238_s29 = int_to_ptr.vmem [resolvable:$true] %s237_s29 }
   0x6   :  { %s285_s30 = scalar_lea.vmem %s238_s29, 16  ;;  %s289_s3 = scalar_lea.vmem %s238_s29, 32 }
   0x7   :  { %p286_p0 = scmp.ne.s32.totalorder %s238_s29, %s285_s30  ;;  %p290_p1 = scmp.lt.s32.totalorder %s238_s29, %s238_s29 }
   0x8   :  { %280 = vmatpush3.bf16.msra.mxu1 %v279_v9  ;;  %p291_p2 = scmp.lt.s32.totalorder %s289_s3, %s285_s30 }
   0xa   :  { %p292_p3 = por %p291_p2, %p290_p1 }
   0xc   :  { %p293_p4 = pnand %p292_p3, %p286_p0 }
  0xd6   :  { %v100_v11 = vpop.f32.mrb[0].mxu0 }
  0xd7   :  { %v101_v12 = vadd.f32 %v245_v10, %v100_v11  ;;  %v263_v13 = vpop.f32.mrb[1].mxu0 }
  0xd9   :  { %v104_v14 = vmax.f32 %v101_v12, 0.0 }
  0xdb   :  { %273 = vmatmul.mubr.msk.f32.vlgmr.msra.gmra.mrb[0].mxu1 %vm109_vm3, %v104_v14 }
 0x1ae   :  { %v179_v16 = vpop.f32.mrb[0].mxu1 }
 0x1af   :  { %v180_v17 = vadd.f32 %v248_v15, %v179_v16  ;;  %v274_v18 = vpop.f32.mrb[1].mxu1 }
 0x1b1   :  { %v183_v20 = vmax.f32 %v180_v17, 0.0 }
 0x1b3   :  { %v188_v21 = vmul.f32 %v250_v19, %v183_v20 }
 0x1b5   :  { %v189_v22 = vsel %vm109_vm3, %v188_v21, 0.0 }
 0x1b6   :  { %190 = vadd.xlane.f32.xlu0 %v189_v22 }
 0x243   :  { %v191_v24 = vpop.xlane.xlu0 %190 }
 0x244   :  { %v196_v25 = vadd.f32 %v251_v23, %v191_v24 }
 0x246   :  { %197 = vxpose.xlu0.b32.start.end [1/1] (short) (narrow) %v196_v25, 8 }
 0x2c6   :  { %v213_v26 = vpop.trf.xlu0 }
 0x2c7   :  { %230 = vst.msk [vmem:[#allocation2] sm:$0x1] %vm229_vm4, %v213_v26 }
 0x2c8   :  { %296 = shalt.err (!%p293_p4)
}
 0x2c9   :  { %s297_s1 = scalar_lea.hbm %s372_s2, 16 }
 0x2ca   :  { %p298_p5 = scmp.ne.s32.totalorder %s372_s2, %s297_s1  ;;  %p301_p6 = scmp.lt.u32.totalorder %s297_s1, %s372_s2 }
 0x2cc   :  { %p303_p7 = pnand %p301_p6, %p298_p5 }
 0x2ce   :  { %306 = shalt.err (!%p303_p7)
}
 0x2cf   :  { %240 = dma.vmem_to_hbm [thread:$0]  %s238_s29, 16, %s372_s2, [#allocation3]  }
 0x2d0   :  { %307 = dma.done.wait [#allocation3], 16  }
 0x2d1   :  { %308 = vsyncadd [#allocation3], 4294967280 }
 0x2d2   :  { %244 = vsyncpa [#allocation3], 1 }

</bundles_post_ra>
